<compile_context>
chip_gen: v5e
topology: v5e:2x2
jax: 0.10.0
libtpu: 0.0.40
codegen_flags: <defaults>
</compile_context>

<pallas_src>
from typing import List, Tuple, Union

import numpy as np
import jax
import jax.numpy as jnp
from jax.experimental import pallas as pl
from jax.experimental.pallas import tpu as pltpu


def _round_up(x: int, m: int) -> int:
    return ((x + m - 1) // m) * m


# ----------------------------------------------------------------------------
# K2 helper: radius-p centered running max along one axis (log-step, XLU rolls).
# The input is padded with -inf by >= 2p on the high side of each axis, so the
# circular wrap of pltpu.roll only ever pulls in -inf for valid positions,
# exactly reproducing MaxPool2d's implicit -inf boundary padding.
# ----------------------------------------------------------------------------
def _centered_window_max(x, p: int, axis: int, size: int):
    def both(v, s):
        return jnp.maximum(pltpu.roll(v, shift=s % size, axis=axis),
                           pltpu.roll(v, shift=(-s) % size, axis=axis))

    m = jnp.maximum(x, both(x, 1))            # radius 1 (window 3)
    if p == 1:
        return m
    if p == 2:
        return jnp.maximum(m, both(x, 2))     # radius 2 (window 5)
    if p == 3:
        return jnp.maximum(m, both(m, 2))     # radius 3 (window 7)
    raise ValueError("unsupported pool radius")


# ----------------------------------------------------------------------------
# K2: peak mask of the center heatmap (hierarchical max-pool + equality mask).
# Output: raw center values at local maxima, -inf elsewhere (sigmoid path), or
# the exact torch `x * (pool(x)==x)` values with -inf only in the padded halo
# (non-sigmoid path).
# ----------------------------------------------------------------------------
def _make_peak_kernel(H: int, W: int, p: int, apply_sigmoid: bool):
    def kernel(hm_ref, out_ref):
        x = hm_ref[0]                                   # (H_pad, W_pad), -inf padded
        H_pad, W_pad = x.shape
        m = _centered_window_max(x, p, axis=0, size=H_pad)   # rows (sublanes)
        m = _centered_window_max(m, p, axis=1, size=W_pad)   # cols (lanes)
        is_peak = m == x
        row = jax.lax.broadcasted_iota(jnp.int32, (H_pad, W_pad), 0)
        col = jax.lax.broadcasted_iota(jnp.int32, (H_pad, W_pad), 1)
        valid = jnp.logical_and(row < H, col < W)
        if apply_sigmoid:
            # Monotonic sigmoid preserves peak mask and top-k order; suppress
            # with -inf and apply sigmoid only to the K selected scores later.
            out = jnp.where(jnp.logical_and(valid, is_peak), x, -jnp.inf)
        else:
            # Exact torch semantics: non-peaks (and suppressed) score 0.
            out = jnp.where(valid, jnp.where(is_peak, x, 0.0), -jnp.inf)
        out_ref[0] = out

    return kernel


def peak_masked_center(center: jnp.ndarray, pool_radius: int, apply_sigmoid: bool):
    """center: [B, H, W] raw center heatmap -> masked [B, H_pad, W_pad], H_pad, W_pad."""
    center = center.astype(jnp.float32)
    B, H, W = center.shape
    p = int(pool_radius)
    H_pad = _round_up(H + 2 * p, 8)
    W_pad = _round_up(W + 2 * p, 128)        # lane-dense output stores
    center_pad = jnp.pad(center, ((0, 0), (0, H_pad - H), (0, W_pad - W)),
                         constant_values=-jnp.inf)
    kernel = _make_peak_kernel(H, W, p, apply_sigmoid)
    out = pl.pallas_call(
        kernel,
        grid=(B,),
        in_specs=[pl.BlockSpec((1, H_pad, W_pad), lambda b: (b, 0, 0))],
        out_specs=pl.BlockSpec((1, H_pad, W_pad), lambda b: (b, 0, 0)),
        out_shape=jax.ShapeDtypeStruct((B, H_pad, W_pad), jnp.float32),
        compiler_params=pltpu.CompilerParams(dimension_semantics=("parallel",)),
    )(center_pad)
    return out, H_pad, W_pad


# ----------------------------------------------------------------------------
# Decoder (forward pass of DEKRPoseEstimationDecodeCallback)
# ----------------------------------------------------------------------------
class DEKRPoseEstimationDecodeCallback:
    def __init__(self, output_stride: int, max_num_people: int, keypoint_threshold: float,
                 nms_threshold: float, nms_num_threshold: int, apply_sigmoid: bool):
        self.output_stride = int(output_stride)
        self.max_num_people = int(max_num_people)
        self.keypoint_threshold = float(keypoint_threshold)
        self.nms_threshold = float(nms_threshold)
        self.nms_num_threshold = int(nms_num_threshold)
        self.apply_sigmoid = bool(apply_sigmoid)
        self._device_fn = jax.jit(self._device_decode)

    # ------------------------------------------------------------------ device
    def _device_decode(self, heatmap, offset):
        """heatmap: [B, J+1, H, W], offset: [B, 2J, H, W] -> fixed K-sized tensors."""
        heatmap = heatmap.astype(jnp.float32)
        offset = offset.astype(jnp.float32)
        B, C, H, W = heatmap.shape
        J = C - 1
        K = self.max_num_people
        stride = self.output_stride
        HI = jax.lax.Precision.HIGHEST       # exact one-hot MXU gathers

        # -- K2: peak-masked center map (Pallas) + top-K center proposals ------
        map_size = (H + W) / 2.0
        p = 3 if map_size > 300 else (2 if map_size > 200 else 1)
        masked, H_pad, W_pad = peak_masked_center(heatmap[:, -1], p, self.apply_sigmoid)
        scores_raw, ind = jax.lax.top_k(masked.reshape(B, H_pad * W_pad), K)   # [B,K]
        yk = jnp.minimum(ind // W_pad, H - 1)
        xk = jnp.minimum(ind % W_pad, W - 1)
        scores_k = jax.nn.sigmoid(scores_raw) if self.apply_sigmoid else scores_raw

        # -- offset gather at the K centers (one-hot MXU gather; replaces K1) --
        oh_y = (yk[..., None] == jnp.arange(H, dtype=jnp.int32)).astype(jnp.float32)   # [B,K,H]
        oh_x = (xk[..., None] == jnp.arange(W, dtype=jnp.int32)).astype(jnp.float32)   # [B,K,W]
        t = jnp.einsum('bkx,bcyx->bkcy', oh_x, offset, precision=HI)                   # [B,K,2J,H]
        off_at = jnp.einsum('bky,bkcy->bkc', oh_y, t, precision=HI)                    # [B,K,2J]
        off_x = off_at[:, :, 0::2]                                                     # [B,K,J]
        off_y = off_at[:, :, 1::2]
        pose_x = stride * (xk.astype(jnp.float32)[..., None] - off_x)                  # [B,K,J]
        pose_y = stride * (yk.astype(jnp.float32)[..., None] - off_y)

        # -- heat values via the virtual upsample (closed-form align_corners ---
        # -- bilinear + right/bottom replication pad; 4 corner gathers) --------
        Hs, Ws = stride * H, stride * W
        yb = jnp.clip(jnp.floor(pose_y), 0, Hs - 1).astype(jnp.int32)                  # [B,K,J]
        xl = jnp.clip(jnp.floor(pose_x), 0, Ws - 1).astype(jnp.int32)
        oo_y = jnp.minimum(yb, stride * (H - 1))
        r0 = oo_y // stride
        fy = (oo_y - r0 * stride).astype(jnp.float32) / float(stride)
        r1 = jnp.minimum(r0 + 1, H - 1)
        oo_x = jnp.minimum(xl, stride * (W - 1))
        c0 = oo_x // stride
        fx = (oo_x - c0 * stride).astype(jnp.float32) / float(stride)
        c1 = jnp.minimum(c0 + 1, W - 1)

        r_idx = jnp.stack([r0, r1], axis=-1)                                           # [B,K,J,2]
        c_idx = jnp.stack([c0, c1], axis=-1)
        oh_r = (r_idx[..., None] == jnp.arange(H, dtype=jnp.int32)).astype(jnp.float32)  # [B,K,J,2,H]
        oh_c = (c_idx[..., None] == jnp.arange(W, dtype=jnp.int32)).astype(jnp.float32)  # [B,K,J,2,W]
        hm_j = heatmap[:, :J]                                                           # [B,J,H,W] (raw)
        t2 = jnp.einsum('bkjay,bjyx->bkjax', oh_r, hm_j, precision=HI)                  # [B,K,J,2,W]
        corners = jnp.einsum('bkjax,bkjcx->bkjac', t2, oh_c, precision=HI)              # [B,K,J,2,2]
        if self.apply_sigmoid:
            # Torch applies sigmoid before interpolation -> sigmoid the corners.
            corners = jax.nn.sigmoid(corners)
        v00 = corners[..., 0, 0]
        v01 = corners[..., 0, 1]
        v10 = corners[..., 1, 0]
        v11 = corners[..., 1, 1]
        heatval = ((1.0 - fy) * (1.0 - fx) * v00 + (1.0 - fy) * fx * v01
                   + fy * (1.0 - fx) * v10 + fy * fx * v11)                             # [B,K,J]

        heat_score = jnp.mean(heatval, axis=2)                                          # [B,K]
        pose_score = scores_k[..., None] * heatval                                      # [B,K,J]
        poses_full = jnp.stack([pose_x, pose_y, pose_score], axis=-1)                   # [B,K,J,3]

        # -- pairwise NMS statistics (folded into glue; squared distances) -----
        wdt = jnp.max(pose_x, axis=-1) - jnp.min(pose_x, axis=-1)                       # [B,K]
        hgt = jnp.max(pose_y, axis=-1) - jnp.min(pose_y, axis=-1)
        area = wdt * wdt + hgt * hgt
        dx = pose_x[:, :, None, :] - pose_x[:, None, :, :]                              # [B,K,K,J]
        dy = pose_y[:, :, None, :] - pose_y[:, None, :, :]
        dist2 = dx * dx + dy * dy
        thr2 = (self.nms_threshold ** 2) * area[:, :, None, None]
        cnt = jnp.sum((dist2 < thr2).astype(jnp.int32), axis=-1)                        # [B,K,K]
        nms_mat = cnt > self.nms_num_threshold

        return scores_k, poses_full, heat_score, nms_mat

    # -------------------------------------------------------------------- host
    def _host_finalize(self, scores_k, poses_full, heat_score, nms_mat):
        scores_k = np.asarray(scores_k)
        poses_full = np.asarray(poses_full)
        heat_score = np.asarray(heat_score)
        nms_mat = np.asarray(nms_mat)

        sel = np.nonzero(scores_k > self.keypoint_threshold)[0]
        if sel.size == 0:
            return [], []
        poses_sel = poses_full[sel]                      # [P, J, 3]
        heat_sel = heat_score[sel]                       # [P]
        nms_sel = nms_mat[np.ix_(sel, sel)]              # [P, P]
        P = sel.size

        # TODO(synk): greedy sequential NMS keep-loop is inherently data-dependent;
        # kept as a host loop mirroring the torch reference exactly.
        ignored, keep = [], []
        for i in range(P):
            if i in ignored:
                continue
            keep_inds = np.nonzero(nms_sel[i])[0].tolist()
            if len(keep_inds) == 0:
                continue
            keep_scores = heat_sel[keep_inds]
            ind = int(np.argmax(keep_scores))
            keep_ind = keep_inds[ind]
            if keep_ind in ignored:
                continue
            keep.append(keep_ind)
            ignored += list(set(keep_inds) - set(ignored))

        poses_out = poses_sel[keep]
        heat_kept = heat_sel[keep]
        if len(keep) > self.max_num_people:
            topk_ids = np.argsort(-heat_kept)[: self.max_num_people]
            poses_out = poses_out[topk_ids]

        if len(poses_out):
            scores = poses_out[:, :, 2].mean(axis=1)
        else:
            scores = []
        if len(poses_out) != len(scores):
            raise RuntimeError("Decoding error detected. Returned mismatching number of poses/scores")
        return poses_out, scores

    # --------------------------------------------------------------------- API
    def decode_one_sized_batch(self, predictions):
        heatmap, offset = predictions
        if heatmap.shape[0] != 1:
            raise RuntimeError("Batch size of 1 is required")
        s, pf, hs, nm = self._device_fn(jnp.asarray(heatmap), jnp.asarray(offset))
        return self._host_finalize(np.asarray(s)[0], np.asarray(pf)[0],
                                   np.asarray(hs)[0], np.asarray(nm)[0])

    def __call__(self, predictions: Union[Tuple[jnp.ndarray, jnp.ndarray]]
                 ) -> Tuple[List[np.ndarray], List[np.ndarray]]:
        heatmap, offset = predictions
        B = heatmap.shape[0]
        # One batched device dispatch; only K-sized arrays come to the host.
        s, pf, hs, nm = self._device_fn(jnp.asarray(heatmap), jnp.asarray(offset))
        s, pf, hs, nm = np.asarray(s), np.asarray(pf), np.asarray(hs), np.asarray(nm)
        all_poses, all_scores = [], []
        for b in range(B):
            poses, scores = self._host_finalize(s[b], pf[b], hs[b], nm[b])
            all_poses.append(poses)
            all_scores.append(scores)
        return all_poses, all_scores


# ----------------------------------------------------------------------------
if __name__ == "__main__":
    # 1-D self-check of the closed-form virtual upsample mapping against an
    # explicit align_corners=True interpolate + right replication pad.
    rng = np.random.RandomState(0)
    for n_in, stride in [(5, 4), (7, 2), (16, 4)]:
        src = rng.randn(n_in).astype(np.float32)
        n_mid = stride * (n_in - 1) + 1
        mid = np.empty(n_mid, np.float32)
        for o in range(n_mid):
            sidx = o * (n_in - 1) / (n_mid - 1) if n_mid > 1 else 0.0
            a0 = int(np.floor(sidx))
            fr = sidx - a0
            a1 = min(a0 + 1, n_in - 1)
            mid[o] = (1.0 - fr) * src[a0] + fr * src[a1]
        ref = np.concatenate([mid, np.full(stride - 1, mid[-1], np.float32)])
        for o in range(stride * n_in):
            oo = min(o, stride * (n_in - 1))
            a0 = oo // stride
            fr = (oo - a0 * stride) / stride
            a1 = min(a0 + 1, n_in - 1)
            val = (1.0 - fr) * src[a0] + fr * src[a1]
            assert abs(val - ref[o]) < 1e-5

    key = jax.random.PRNGKey(0)
    k1, k2 = jax.random.split(key)
    B, J, H, W = 2, 4, 16, 16
    heatmap = jax.random.normal(k1, (B, J + 1, H, W), dtype=jnp.float32)
    offset = jax.random.normal(k2, (B, 2 * J, H, W), dtype=jnp.float32) * 2.0

    decoder = DEKRPoseEstimationDecodeCallback(
        output_stride=4,
        max_num_people=8,
        keypoint_threshold=0.01,
        nms_threshold=0.05,
        nms_num_threshold=2,
        apply_sigmoid=True,
    )

    # Run the Pallas kernel directly once and block explicitly on its output.
    masked, _, _ = peak_masked_center(heatmap[:, -1], pool_radius=1, apply_sigmoid=True)
    jax.block_until_ready(masked)

    all_poses, all_scores = decoder((heatmap, offset))
    assert len(all_poses) == B and len(all_scores) == B
    for pb, sb in zip(all_poses, all_scores):
        assert len(pb) == len(sb)

    # Exercise the non-sigmoid kernel variant and the single-sample API too.
    decoder2 = DEKRPoseEstimationDecodeCallback(
        output_stride=4,
        max_num_people=8,
        keypoint_threshold=0.01,
        nms_threshold=0.05,
        nms_num_threshold=2,
        apply_sigmoid=False,
    )
    p1, s1 = decoder2.decode_one_sized_batch((heatmap[:1], offset[:1]))
    assert len(p1) == len(s1)

    print("KERNEL_OK")
</pallas_src>

<mosaic_0001>
module attributes {stable_mosaic.version = 11 : i64} {
  func.func @kernel(%arg0: i32, %arg1: memref<1x24x128xf32, #tpu.memory_space<vmem>>, %arg2: memref<1x24x128xf32, #tpu.memory_space<vmem>>) attributes {dimension_semantics = [#tpu.dimension_semantics<parallel>], iteration_bounds = array<i64: 2>, scalar_prefetch = 0 : i64, scratch_operands = 0 : i64, tpu.core_type = #tpu.core_type<tc>, window_params = [{transform_indices = @transform_0, window_bounds = array<i64: 1, 24, 128>}, {transform_indices = @transform_1, window_bounds = array<i64: 1, 24, 128>}]} {
    %c0 = arith.constant 0 : index
    %c0_0 = arith.constant 0 : index
    %c0_1 = arith.constant 0 : index
    %0 = vector.load %arg1[%c0, %c0_0, %c0_1] : memref<1x24x128xf32, #tpu.memory_space<vmem>>, vector<1x24x128xf32>
    %1 = vector.shape_cast %0 : vector<1x24x128xf32> to vector<24x128xf32>
    %c1_i32 = arith.constant 1 : i32
    %2 = tpu.dynamic_rotate %1 by %c1_i32 dim 0 : vector<24x128xf32>, i32 -> vector<24x128xf32>
    %c23_i32 = arith.constant 23 : i32
    %3 = tpu.dynamic_rotate %1 by %c23_i32 dim 0 : vector<24x128xf32>, i32 -> vector<24x128xf32>
    %4 = arith.maximumf %2, %3 : vector<24x128xf32>
    %5 = arith.maximumf %1, %4 : vector<24x128xf32>
    %c1_i32_2 = arith.constant 1 : i32
    %6 = tpu.dynamic_rotate %5 by %c1_i32_2 dim 1 : vector<24x128xf32>, i32 -> vector<24x128xf32>
    %c127_i32 = arith.constant 127 : i32
    %7 = tpu.dynamic_rotate %5 by %c127_i32 dim 1 : vector<24x128xf32>, i32 -> vector<24x128xf32>
    %8 = arith.maximumf %6, %7 : vector<24x128xf32>
    %9 = arith.maximumf %5, %8 : vector<24x128xf32>
    %10 = arith.cmpf oeq, %9, %1 : vector<24x128xf32>
    %11 = tpu.iota {dimensions = array<i32: 0>} : vector<24x128xi32>
    %12 = tpu.iota {dimensions = array<i32: 1>} : vector<24x128xi32>
    %c16_i32 = arith.constant 16 : i32
    %13 = vector.broadcast %c16_i32 : i32 to vector<24x128xi32>
    %14 = arith.cmpi slt, %11, %13 : vector<24x128xi32>
    %c16_i32_3 = arith.constant 16 : i32
    %15 = vector.broadcast %c16_i32_3 : i32 to vector<24x128xi32>
    %16 = arith.cmpi slt, %12, %15 : vector<24x128xi32>
    %17 = arith.andi %14, %16 : vector<24x128xi1>
    %18 = arith.andi %17, %10 : vector<24x128xi1>
    %cst = arith.constant 0xFF800000 : f32
    %19 = vector.broadcast %cst : f32 to vector<24x128xf32>
    %20 = arith.select %18, %1, %19 : vector<24x128xi1>, vector<24x128xf32>
    %c0_4 = arith.constant 0 : index
    %c0_5 = arith.constant 0 : index
    %c0_6 = arith.constant 0 : index
    %21 = vector.load %arg2[%c0_4, %c0_5, %c0_6] : memref<1x24x128xf32, #tpu.memory_space<vmem>>, vector<1x24x128xf32>
    %22 = vector.shape_cast %21 : vector<1x24x128xf32> to vector<24x128xf32>
    %23 = vector.shape_cast %20 : vector<24x128xf32> to vector<1x24x128xf32>
    tpu.vector_store %arg2[%c0_4, %c0_5, %c0_6], %23 {strides = array<i32>} : memref<1x24x128xf32, #tpu.memory_space<vmem>>, vector<1x24x128xf32>,
    return
  }
  func.func @transform_0(%arg0: i32) -> (i32, i32, i32) {
    %c0_i32 = arith.constant 0 : i32
    %c0_i32_0 = arith.constant 0 : i32
    %c0_i32_1 = arith.constant 0 : i32
    return %arg0, %c0_i32, %c0_i32_0 : i32, i32, i32
  }
  func.func @transform_1(%arg0: i32) -> (i32, i32, i32) {
    %c0_i32 = arith.constant 0 : i32
    %c0_i32_0 = arith.constant 0 : i32
    %c0_i32_1 = arith.constant 0 : i32
    return %arg0, %c0_i32, %c0_i32_0 : i32, i32, i32
  }
}

</mosaic_0001>

<bundles_post_ra>
// kernel: tpu_custom_call.1
= control target key start
LH: loop header
LB: loop body
LE: loop exit
PB: predicated region body
PF: predicated region fallthrough
CT: control target
= control target key end

     0   :  { %6 = vsyncpa [#allocation3], 0  ;;  %s597_s0 = inlined_call_operand.hbm [shape: f32[2,24,128], index: 0, kind: input, shape index: {}]   ;;  %s598_s1 = inlined_call_operand.hbm [shape: f32[2,24,128], index: 1, kind: output, shape index: {}]  }
   0x1   :  { %8 = vsyncpa [#allocation3 + $0x1], 0 }
   0x2   :  { %9 = vsyncpa [#allocation4], 0 }
   0x3   :  { %11 = vsyncpa [#allocation4 + $0x1], 0  ;;  %s472_s6 = smov 0   ;;  %s474_s7 = smov 0  }
   0x4   :  { %s476_s8 = smov 0   ;;  %s478_s9 = smov 0  }
   0x5 LB: > { %s493_s10 = sadd.s32 4294967295, %s453_s9   ;;  %s292_s11 = sadd.s32 4294967294, %s453_s9   ;;  %s453_s9 = sphi %s478_s9, %s606_s9   ;;  %s449_s8 = sphi %s476_s8, %s605_s8   ;;  %s445_s7 = sphi %s474_s7, %s604_s7   ;;  %s441_s6 = sphi %s472_s6, %s603_s6  }
   0x6   : > { %s497_s12 = sadd.s32 1, %s453_s9   ;;  %s24_s13 = sadd.s32 1, %s449_s8 }
   0x7   : > { %s21_s14 = ssub.s32 %s453_s9, %s497_s12  ;;  %p31_p0 = scmp.ne.s32.totalorder %s449_s8, %s445_s7 }
   0x8   : > { %p22_p1 = scmp.eq.s32.totalorder %s21_s14, 0  ;;  %p32_p2 = scmp.eq.s32.totalorder %s453_s9, 0 }
   0x9   : > { %p37_p3 = scmp.ne.s32.totalorder %s445_s7, %s441_s6  ;;  %p38_p4 = scmp.eq.s32.totalorder %s493_s10, 0 }
   0xa   : > { %s509_s15 = scalar_select %p22_p1, %s449_s8, %s24_s13  }
   0xb   : > { %p33_p5 = por %p32_p2, %p31_p0  ;;  %p511_p6 = por %p38_p4, %p37_p3 }
   0xc   : > { %p61_p7 = scmp.eq.s32.totalorder %s493_s10, 1  ;;  %p67_p8 = scmp.eq.s32.totalorder %s292_s11, 1 }
   0xd   : > { %p294_p9 = scmp.ge.s32.totalorder %s453_s9, 2  ;;  %p316_p10 = scmp.lt.s32.totalorder %s453_s9, 2 }
   0xe   : > { %p518_p11 = por %p61_p7, %p31_p0  ;;  %p522_p12 = por %p67_p8, %p37_p3 }
   0xf   : > { %s87_s19 = sand.u32 1, %s449_s8   ;;  %s301_s20 = smul.u32 24, %s453_s9 }
  0x10   : > { %s300_s21 = smul.u32 24, %s87_s19  ;;  %p531_p13 = pnand %p316_p10, %p33_p5 }
  0x11   : > { %s96_s24 = scalar_lea.hbm %s597_s0, %s301_s20  ;;  %s88_s29 = scalar_lea.sflag [#allocation3], %s87_s19 }
  0x12   : > { %s97_s26 = sshll.u32 %s96_s24, 4  ;;  %s91_s27 = scalar_lea.vmem [#allocation2], %s300_s21  ;;  %s98_s26 = int_to_ptr.hbm [resolvable:$true] %s97_s26 }
  0x13   : > { %s99_s28 = sshll.u32 %s91_s27, 4  ;;  %s357_s30 = sshra.s32 %s98_s26, 4  ;;  %s100_s28 = int_to_ptr.vmem [resolvable:$true] %s99_s28  ;;  %s358_s30 = int_to_ptr.hbm [resolvable:$true] %s357_s30 }
  0x14   : > { %s359_s2 = scalar_lea.hbm %s358_s30, 24  ;;  %p361_p1 = pneg %p531_p13 }
  0x15   : > { %p360_p0 = scmp.ne.s32.totalorder %s358_s30, %s359_s2  ;;  %s364_s5 = scalar_lea.hbm %s597_s0, 48 }
  0x16   : > { %p365_p4 = scmp.lt.s32.totalorder %s358_s30, %s597_s0  ;;  %p366_p5 = scmp.lt.s32.totalorder %s364_s5, %s359_s2 }
  0x17   : > { %p362_p2 = pnand %p361_p1, %p360_p0 }
  0x18   : > { %p367_p7 = por %p366_p5, %p365_p4 }
  0x19   : > { %p363_p3 = pneg %p362_p2 }
  0x1b   : > { %p368_p8 = pnand %p367_p7, %p363_p3 }
  0x1d   : > { %371 = shalt.err (!%p368_p8)
}
  0x1e   : > { %s455_s14 = smov 128   ;;  %s456_s19 = smov 8  }
  0x1f   : > { %311 = dma.hbm_to_vmem [thread:$0]  (!%p531_p13), %s98_s26, 384, %s100_s28, %s88_s29, %s455_s14, %s455_s14, %s456_s19  }
  0x20   : > { %p296_p10 = scmp.ge.s32.totalorder %s453_s9, 1  ;;  %p107_p0 = scmp.lt.s32.totalorder %s453_s9, 3 }
  0x22   : > { %p108_p1 = pnand %p296_p10, %p107_p0 }
  0x23   : > { %s548_s20 = sand.u32 (!%p108_p1), 1, %s445_s7  }
  0x24   : > { %111 = sbr.rel (%p108_p1) target bundleno = 186 (0xba), region = 24  ;;  %s114_s22 = scalar_lea.sflag (!%p108_p1), [#allocation3], %s548_s20 }
  0x25   : > { %s302_s21 = smul.u32 (!%p108_p1), 24, %s548_s20 }
  0x27   : > { %s117_s23 = scalar_lea.vmem (!%p108_p1), [#allocation2], %s302_s21 }
  0x29   : > { %432 = dma.done.wait (%p511_p6), %s114_s22, 384  }
  0x2a   : > { %434 = vsyncadd (%p511_p6), %s114_s22, 4294966912  ;;  %v143_v0 = vlaneseq  ;;  %s556_s24 = scalar_lea.vmem [#allocation5], %s302_s21  ;;  %v457_v1 = vmov -inf   ;;  %v137_v3 = vld [vmem:[%s117_s23] sm:$0xff]  ;;  %v138_v4 = vld [vmem:[%s117_s23 + $0x8] sm:$0xff]  ;;  %s458_s16 = smov 127  }
  0x2b   : > { %202 = vst [vmem:[%s556_s24 + $0x10] sm:$0xff] %v457_v1  ;;  %v139_v5 = vld [vmem:[%s117_s23 + $0x10] sm:$0xff]  ;;  %v140_v6 = vrot.slane %v137_v3, 7  ;;  %v149_v8 = vrot.slane %v137_v3, 1  ;;  %v150_v9 = vrot.slane %v138_v4, 1  ;;  %v141_v10 = vrot.slane %v138_v4, 7 }
  0x2c   : > { %v144_v2 = vshrl.u32 %v143_v0, 7  ;;  %v142_v7 = vrot.slane %v139_v5, 7  ;;  %v151_v11 = vrot.slane %v139_v5, 1  ;;  %s459_s25 = smov 1   ;;  %v186_v20 = vand.u32 127, %v143_v0  ;;  %s303_s26 = smul.u32 24, %s493_s10 }
  0x2d   : > { %s216_s30 = sshll.u32 %s556_s24, 4  ;;  %s204_s10 = scalar_lea.sflag [#allocation4], %s548_s20  ;;  %s217_s30 = int_to_ptr.vmem [resolvable:$true] %s216_s30 }
  0x2e   : > { %vm145_vm0 = vcmp.lt.s32.totalorder %v144_v2, 1  ;;  %vm152_vm1 = vcmp.lt.s32.totalorder %v144_v2, 7  ;;  %vm190_vm2 = vcmp.lt.s32.totalorder %v186_v20, 16  ;;  %s215_s29 = scalar_lea.hbm %s598_s1, %s303_s26  ;;  %s407_s13 = scalar_lea.hbm %s598_s1, 48 }
  0x2f   : > { %v148_v12 = vsel %vm145_vm0, %v142_v7, %v140_v6  ;;  %v154_v13 = vsel %vm152_vm1, %v149_v8, %v150_v9  ;;  %v147_v15 = vsel %vm145_vm0, %v140_v6, %v141_v10  ;;  %v153_v16 = vsel %vm152_vm1, %v150_v9, %v151_v11  ;;  %s218_s2 = sshll.u32 %s215_s29, 4  ;;  %s219_s2 = int_to_ptr.hbm [resolvable:$true] %s218_s2 }
  0x30   : > { %v156_v14 = vmax.f32 %v148_v12, %v154_v13  ;;  %v157_v18 = vmax.f32 %v147_v15, %v153_v16  ;;  %s401_s3 = sshra.s32 %s219_s2, 4  ;;  %s402_s3 = int_to_ptr.hbm [resolvable:$true] %s401_s3 }
  0x31   : > { %s403_s4 = scalar_lea.hbm %s402_s3, 24  ;;  %p408_p3 = scmp.lt.s32.totalorder %s402_s3, %s598_s1 }
  0x32   : > { %v159_v17 = vmax.f32 %v137_v3, %v156_v14  ;;  %v160_v19 = vmax.f32 %v138_v4, %v157_v18  ;;  %p404_p6 = scmp.ne.s32.totalorder %s402_s3, %s403_s4  ;;  %p409_p4 = scmp.lt.s32.totalorder %s407_s13, %s403_s4 }
  0x34   : > { %168 = vrot.lane.b32.xlu1 %v159_v17, %s458_s16  ;;  %162 = vrot.lane.b32.xlu0 %v159_v17, %s459_s25  ;;  %p405_p13 = pnand %p404_p6, %p518_p11  ;;  %p410_p5 = por %p409_p4, %p408_p3 }
  0x36   : > { %p406_p2 = pneg %p405_p13 }
  0x38   : > { %p411_p7 = pnand %p410_p5, %p406_p2 }
  0x3c   : > { %170 = vrot.lane.b32.xlu1 %v160_v19, %s458_s16  ;;  %164 = vrot.lane.b32.xlu0 %v160_v19, %s459_s25 }
  0xa6   : > { %v169_v21 = vpop.permute.xlu1 %168  ;;  %v163_v22 = vpop.permute.xlu0 %162 }
  0xa7   : > { %v174_v23 = vmax.f32 %v163_v22, %v169_v21 }
  0xa9   : > { %v177_v24 = vmax.f32 %v159_v17, %v174_v23 }
  0xab   : > { %vm180_vm3 = vcmp.eq.f32.partialorder %v177_v24, %v137_v3 }
  0xac   : > { %vm194_vm4 = vmand %vm190_vm2, %vm180_vm3 }
  0xad   : > { %v197_v25 = vsel %vm194_vm4, %v137_v3, -inf }
  0xae   : > { %200 = vst [vmem:[%s556_s24] sm:$0xff] %v197_v25  ;;  %v171_v26 = vpop.permute.xlu1 %170  ;;  %v165_v27 = vpop.permute.xlu0 %164 }
  0xaf   : > { %v175_v28 = vmax.f32 %v165_v27, %v171_v26 }
  0xb1   : > { %v178_v29 = vmax.f32 %v160_v19, %v175_v28 }
  0xb3   : > { %vm181_vm5 = vcmp.eq.f32.partialorder %v178_v29, %v138_v4 }
  0xb4   : > { %vm195_vm6 = vmand %vm190_vm2, %vm181_vm5 }
  0xb5   : > { %v198_v30 = vsel %vm195_vm6, %v138_v4, -inf }
  0xb6   : > { %201 = vst [vmem:[%s556_s24 + $0x8] sm:$0xff] %v198_v30 }
  0xb7   : > { %414 = shalt.err (!%p411_p7)
}
  0xb8   : > { %s460_s20 = smov 128   ;;  %s461_s21 = smov 8  }
  0xb9   : > { %306 = dma.vmem_to_hbm [thread:$0]  (%p518_p11), %s217_s30, 384, %s219_s2, %s204_s10, %s460_s20, %s460_s20, %s461_s21  }
  0xba PF: > { %s233_s22 = sand.u32 1, %s441_s6   ;;  %p313_p8 = pnand %p294_p9, %p522_p12 }
  0xbb   : > { %s234_s23 = scalar_lea.sflag [#allocation4], %s233_s22 }
  0xbc   : > { %p314_p10 = pneg %p313_p8 }
  0xbe   : > { %436 = dma.done.wait (%p314_p10), %s234_s23, 384  }
  0xbf   : > { %438 = vsyncadd (%p314_p10), %s234_s23, 4294966912  ;;  %p14_p0 = scmp.ge.s32.totalorder %s497_s12, 4   ;;  %s603_s6 = smov %s445_s7 }
  0xc0   : > { %s604_s7 = smov %s449_s8  ;;  %s605_s8 = smov %s509_s15 }
  0xc1   : > { %s606_s9 = smov %s497_s12  ;;  %16 = sbr.rel (!%p14_p0) target bundleno = 5 (0x5), region = 69 }
  0xc6   :  { %240 = vsyncpa [#allocation3], 1 }
  0xc7   :  { %242 = vsyncpa [#allocation3 + $0x1], 1 }
  0xc8   :  { %243 = vsyncpa [#allocation4], 1 }
  0xc9   :  { %245 = vsyncpa [#allocation4 + $0x1], 1 }

</bundles_post_ra>
